<compile_context>
chip_gen: v7x
topology: tpu7x:2x2x1
jax: 0.10.0
libtpu: 0.0.40
codegen_flags: <defaults>
</compile_context>

<pallas_src>
import functools

import jax
import jax.numpy as jnp
from jax.experimental import pallas as pl
from jax.experimental.pallas import tpu as pltpu


def _convpool_kernel(pT_ref, wT_ref, b_ref, out_ref):
    """One M-tile of one ConvBlock (conv-as-matmul + 2x2 max-pool).

    pT_ref:  (4, KKCp, MT)  bf16 -- 4 = conv-output positions in a 2x2 window
    wT_ref:  (CoutP, KKCp)  bf16
    b_ref:   (CoutP, 1)     f32
    out_ref: (CoutP, MT)    f32  -- CoutP % 8 == 0, MT % 128 == 0 (dense vst)
    """
    # Upcast the bf16 tiles to f32 for the dot: keeps DMA at bf16 width while
    # avoiding the unsupported bf16 x bf16 -> f32 dot on the interpret/CPU
    # path; on TPU the matmul is mem-bound so the f32 MXU rate is irrelevant.
    w = wT_ref[...].astype(jnp.float32)

    def dot_q(q):
        return jnp.dot(w, pT_ref[q].astype(jnp.float32),
                       preferred_element_type=jnp.float32)

    # Running max over the 4 conv outputs feeding one pooled output
    # == MaxPool2d(2, 2).  Max tree for a little ILP.
    acc = jnp.maximum(jnp.maximum(dot_q(0), dot_q(1)),
                      jnp.maximum(dot_q(2), dot_q(3)))
    # Bias hoisted out of the max: identical numerics, one VPU add not four.
    out_ref[...] = acc + b_ref[...]


def _round_up(x, m):
    return ((x + m - 1) // m) * m


# Conservative per-step working-set cap: safe under v7x's 64 MiB physical VMEM
# and v5e/v6e default scoped limits once vmem_limit_bytes is raised.
_VMEM_WORKSET_BUDGET = 24 << 20


def _choose_m_tile(M, kkc_p, cout_p):
    """Pick MT from {128,256,512}: fit VMEM, prefer >=2 grid steps (v7x
    megacore) when M allows, minimize M-padding waste, then prefer the
    larger tile (lower per-step overhead)."""
    best_key, best = None, None
    for mt in (128, 256, 512):
        mp = max(mt, _round_up(M, mt))
        tiles = mp // mt
        step = (2 * (4 * kkc_p * mt * 2)   # double-buffered bf16 patch tile
                + 2 * (cout_p * mt * 4)    # double-buffered f32 output tile
                + cout_p * kkc_p * 2       # weights (bf16)
                + cout_p * 4)              # bias
        fits = step <= _VMEM_WORKSET_BUDGET
        waste_bucket = (mp - M) // 128
        key = (not fits, tiles < 2 and M > 128, waste_bucket, -mt)
        if best_key is None or key < best_key:
            best_key, best = key, (mt, mp, tiles, step)
    return best


def conv_block_forward(x_cbhw, weight, bias, kernel_size):
    """ConvBlock.forward: Conv2d (valid, stride 1) + MaxPool2d(2, 2).

    x_cbhw: [Cin, B, H, W]      channel-leading activation layout
    weight: [Cout, Cin, K, K]   float32 (OIHW, like PyTorch)
    bias:   [Cout]              float32
    returns [Cout, B, PH, PW]   float32, PH = (H-K+1)//2, PW = (W-K+1)//2
    """
    Cin, B, H, W = x_cbhw.shape
    Cout = weight.shape[0]
    K = kernel_size
    OH, OW = H - K + 1, W - K + 1
    PH, PW = OH // 2, OW // 2
    KK = K * K
    KKC = KK * Cin
    M = B * PH * PW                       # fused (batch, pooled-spatial) axis

    CoutP = _round_up(Cout, 8)            # full sublane tiles for f32 stores
    KKCp = _round_up(KKC, 16)             # aligned bf16 sublane packing
    MT, Mp, n_m_tiles, step_bytes = _choose_m_tile(M, KKCp, CoutP)
    # TODO(synk): for very deep layers where even MT=128 busts the budget, add
    # a KKC reduction grid axis ("arbitrary") with f32 accumulators in scratch.

    # ---- glue: im2col in plain JAX, bf16 BEFORE the K*K expansion ----------
    xb = x_cbhw.astype(jnp.bfloat16)                       # [Cin, B, H, W]
    cols = [xb[:, :, ki:ki + 2 * PH, kj:kj + 2 * PW]
            for ki in range(K) for kj in range(K)]
    patches = jnp.stack(cols, axis=0)                      # [KK,Cin,B,2PH,2PW]
    p = patches.reshape(KK, Cin, B, PH, 2, PW, 2)
    p = jnp.transpose(p, (4, 6, 0, 1, 2, 3, 5))            # [2,2,KK,Cin,B,PH,PW]
    pT = p.reshape(4, KKC, M)
    pT = jnp.pad(pT, ((0, 0), (0, KKCp - KKC), (0, Mp - M)))

    # Weight: OIHW -> [Cout, K*K*Cin], feature order (ki, kj, ci) matching the
    # patches; zero-pad rows/cols (exact); bias as a (CoutP, 1) lane broadcast.
    wT = jnp.transpose(weight, (0, 2, 3, 1)).reshape(Cout, KKC)
    wT = jnp.pad(wT, ((0, CoutP - Cout), (0, KKCp - KKC))).astype(jnp.bfloat16)
    b2 = jnp.pad(bias.astype(jnp.float32), (0, CoutP - Cout)).reshape(CoutP, 1)

    cost = pl.CostEstimate(
        flops=2 * 4 * CoutP * KKCp * Mp,
        transcendentals=0,
        bytes_accessed=pT.size * 2 + wT.size * 2 + b2.size * 4 + CoutP * Mp * 4,
    )

    p_spec = pl.BlockSpec((4, KKCp, MT), lambda j: (0, 0, j))
    step3_bytes = step_bytes + 4 * KKCp * MT * 2           # one extra pT buffer
    if n_m_tiles >= 3 and step3_bytes <= _VMEM_WORKSET_BUDGET:
        # Per-step compute is tiny -> pipeline is DMA-ramp limited; a third
        # patch buffer hides more of the prologue.
        p_spec = pl.BlockSpec((4, KKCp, MT), lambda j: (0, 0, j),
                              pipeline_mode=pl.Buffered(3))

    vmem_limit = int(min(max(2 * step_bytes, 16 << 20), 48 << 20))

    out_t = pl.pallas_call(
        _convpool_kernel,
        out_shape=jax.ShapeDtypeStruct((CoutP, Mp), jnp.float32),
        grid_spec=pltpu.PrefetchScalarGridSpec(
            num_scalar_prefetch=0,
            grid=(n_m_tiles,),
            in_specs=[
                p_spec,
                pl.BlockSpec((CoutP, KKCp), lambda j: (0, 0)),
                pl.BlockSpec((CoutP, 1), lambda j: (0, 0)),
            ],
            out_specs=pl.BlockSpec((CoutP, MT), lambda j: (0, j)),
        ),
        compiler_params=pltpu.CompilerParams(
            dimension_semantics=("parallel",),
            vmem_limit_bytes=vmem_limit,
        ),
        cost_estimate=cost,
    )(pT, wT, b2)

    # (CoutP, Mp) -> drop channel/M padding -> [Cout, B, PH, PW] (still
    # channel-leading: the next block consumes this layout directly).
    return out_t[:Cout, :M].reshape(Cout, B, PH, PW)


def init_conv_net_params(key, layer_num, channel_size, kernel_size):
    """Conv weights/biases matching ConvNet.__init__ (PyTorch default init)."""
    in_out = [(3, channel_size)]
    for i in range(layer_num):
        in_out.append((channel_size * (i + 1), channel_size * (i + 2)))
    params = []
    for cin, cout in in_out:
        key, kw, kb = jax.random.split(key, 3)
        fan_in = cin * kernel_size * kernel_size
        bound = float(1.0 / (fan_in ** 0.5))
        w = jax.random.uniform(kw, (cout, cin, kernel_size, kernel_size),
                               jnp.float32, -bound, bound)
        b = jax.random.uniform(kb, (cout,), jnp.float32, -bound, bound)
        params.append((w, b))
    return params


def conv_net_forward(x_nchw, params, kernel_size):
    """ConvNet.forward: apply every ConvBlock in sequence.

    NCHW <-> channel-leading conversion happens ONCE at the network boundary;
    between blocks the activations stay in the kernel's natural layout.
    """
    x = jnp.transpose(x_nchw, (1, 0, 2, 3))       # [C, B, H, W]
    for w, b in params:
        x = conv_block_forward(x, w, b, kernel_size)
    return jnp.transpose(x, (1, 0, 2, 3))         # back to [B, C, H, W]


def _reference_block(x, weight, bias, round_bf16):
    if round_bf16:
        # Mirror the kernel's bf16-rounded matmul inputs (f32 accumulation).
        x = x.astype(jnp.bfloat16).astype(jnp.float32)
        weight = weight.astype(jnp.bfloat16).astype(jnp.float32)
    y = jax.lax.conv_general_dilated(
        x, weight, window_strides=(1, 1), padding="VALID",
        dimension_numbers=("NCHW", "OIHW", "NCHW"))
    y = y + bias[None, :, None, None]
    return jax.lax.reduce_window(
        y, -jnp.inf, jax.lax.max,
        window_dimensions=(1, 1, 2, 2), window_strides=(1, 1, 2, 2),
        padding="VALID")


def reference_forward(x, params, round_bf16):
    for w, b in params:
        x = _reference_block(x, w, b, round_bf16)
    return x


if __name__ == "__main__":
    # ConvNet(layer_num=1, input_channel=3, channel_size=4, kernel_size=3)
    # applied to a [2, 3, 16, 16] input:
    #   block 0: Conv(3 -> 4, k=3): 16 -> 14, pool -> 7
    #   block 1: Conv(4 -> 8, k=3):  7 ->  5, pool -> 2
    LAYER_NUM, CHANNEL_SIZE, KERNEL_SIZE = 1, 4, 3
    B, H, W = 2, 16, 16

    key = jax.random.PRNGKey(0)
    key, kx = jax.random.split(key)
    x = jax.random.normal(kx, (B, 3, H, W), dtype=jnp.float32)
    params = init_conv_net_params(key, LAYER_NUM, CHANNEL_SIZE, KERNEL_SIZE)

    fwd = jax.jit(functools.partial(conv_net_forward, kernel_size=KERNEL_SIZE))
    out = jax.block_until_ready(fwd(x, params))

    # Check vs. a lax conv/pool reference fed the same bf16-rounded matmul
    # inputs (remaining differences are f32 accumulation order + per-block
    # bf16 re-rounding of the activations only).
    ref = jax.block_until_ready(reference_forward(x, params, round_bf16=True))
    assert out.shape == ref.shape == (B, CHANNEL_SIZE * (LAYER_NUM + 1), 2, 2)
    assert jnp.allclose(out, ref, atol=1e-2, rtol=1e-2), \
        float(jnp.max(jnp.abs(out - ref)))

    # Fidelity check vs. pure-f32 PyTorch semantics (bf16-level tolerance).
    ref32 = jax.block_until_ready(
        reference_forward(x, params, round_bf16=False))
    assert jnp.allclose(out, ref32, atol=5e-2, rtol=5e-2), \
        float(jnp.max(jnp.abs(out - ref32)))

    print("KERNEL_OK")
</pallas_src>

<mosaic_0001>
module attributes {stable_mosaic.version = 11 : i64} {
  func.func @_convpool_kernel(%arg0: i32, %arg1: memref<4x32x128xbf16, #tpu.memory_space<vmem>>, %arg2: memref<8x32xbf16, #tpu.memory_space<vmem>>, %arg3: memref<8x1xf32, #tpu.memory_space<vmem>>, %arg4: memref<8x128xf32, #tpu.memory_space<vmem>>) attributes {dimension_semantics = [#tpu.dimension_semantics<parallel>], iteration_bounds = array<i64: 1>, scalar_prefetch = 0 : i64, scratch_operands = 0 : i64, tpu.core_type = #tpu.core_type<tc>, window_params = [{transform_indices = @transform_0, window_bounds = array<i64: 4, 32, 128>}, {pipeline_mode = #tpu.pipeline_mode<synchronous>, transform_indices = @transform_1, window_bounds = array<i64: 8, 32>}, {pipeline_mode = #tpu.pipeline_mode<synchronous>, transform_indices = @transform_2, window_bounds = array<i64: 8, 1>}, {transform_indices = @transform_3, window_bounds = array<i64: 8, 128>}]} {
    %c0 = arith.constant 0 : index
    %c0_0 = arith.constant 0 : index
    %0 = vector.load %arg2[%c0, %c0_0] : memref<8x32xbf16, #tpu.memory_space<vmem>>, vector<8x32xbf16>
    %1 = arith.extf %0 : vector<8x32xbf16> to vector<8x32xf32>
    %c0_1 = arith.constant 0 : index
    %c0_2 = arith.constant 0 : index
    %c0_3 = arith.constant 0 : index
    %2 = vector.load %arg1[%c0_1, %c0_2, %c0_3] : memref<4x32x128xbf16, #tpu.memory_space<vmem>>, vector<1x32x128xbf16>
    %3 = vector.shape_cast %2 : vector<1x32x128xbf16> to vector<32x128xbf16>
    %4 = arith.extf %3 : vector<32x128xbf16> to vector<32x128xf32>
    %cst = arith.constant dense<0.000000e+00> : vector<8x128xf32>
    %5 = tpu.matmul %1, %4, %cst {dimension_numbers = #tpu.dot_dimension_numbers<[1], [0], [0], [1], [0, 0, 1, 1], [], []>} : vector<8x32xf32>, vector<32x128xf32>, vector<8x128xf32> -> vector<8x128xf32>
    %c1 = arith.constant 1 : index
    %c0_4 = arith.constant 0 : index
    %c0_5 = arith.constant 0 : index
    %6 = vector.load %arg1[%c1, %c0_4, %c0_5] : memref<4x32x128xbf16, #tpu.memory_space<vmem>>, vector<1x32x128xbf16>
    %7 = vector.shape_cast %6 : vector<1x32x128xbf16> to vector<32x128xbf16>
    %8 = arith.extf %7 : vector<32x128xbf16> to vector<32x128xf32>
    %cst_6 = arith.constant dense<0.000000e+00> : vector<8x128xf32>
    %9 = tpu.matmul %1, %8, %cst_6 {dimension_numbers = #tpu.dot_dimension_numbers<[1], [0], [0], [1], [0, 0, 1, 1], [], []>} : vector<8x32xf32>, vector<32x128xf32>, vector<8x128xf32> -> vector<8x128xf32>
    %10 = arith.maximumf %5, %9 : vector<8x128xf32>
    %c2 = arith.constant 2 : index
    %c0_7 = arith.constant 0 : index
    %c0_8 = arith.constant 0 : index
    %11 = vector.load %arg1[%c2, %c0_7, %c0_8] : memref<4x32x128xbf16, #tpu.memory_space<vmem>>, vector<1x32x128xbf16>
    %12 = vector.shape_cast %11 : vector<1x32x128xbf16> to vector<32x128xbf16>
    %13 = arith.extf %12 : vector<32x128xbf16> to vector<32x128xf32>
    %cst_9 = arith.constant dense<0.000000e+00> : vector<8x128xf32>
    %14 = tpu.matmul %1, %13, %cst_9 {dimension_numbers = #tpu.dot_dimension_numbers<[1], [0], [0], [1], [0, 0, 1, 1], [], []>} : vector<8x32xf32>, vector<32x128xf32>, vector<8x128xf32> -> vector<8x128xf32>
    %c3 = arith.constant 3 : index
    %c0_10 = arith.constant 0 : index
    %c0_11 = arith.constant 0 : index
    %15 = vector.load %arg1[%c3, %c0_10, %c0_11] : memref<4x32x128xbf16, #tpu.memory_space<vmem>>, vector<1x32x128xbf16>
    %16 = vector.shape_cast %15 : vector<1x32x128xbf16> to vector<32x128xbf16>
    %17 = arith.extf %16 : vector<32x128xbf16> to vector<32x128xf32>
    %cst_12 = arith.constant dense<0.000000e+00> : vector<8x128xf32>
    %18 = tpu.matmul %1, %17, %cst_12 {dimension_numbers = #tpu.dot_dimension_numbers<[1], [0], [0], [1], [0, 0, 1, 1], [], []>} : vector<8x32xf32>, vector<32x128xf32>, vector<8x128xf32> -> vector<8x128xf32>
    %19 = arith.maximumf %14, %18 : vector<8x128xf32>
    %20 = arith.maximumf %10, %19 : vector<8x128xf32>
    %c0_13 = arith.constant 0 : index
    %c0_14 = arith.constant 0 : index
    %21 = vector.load %arg3[%c0_13, %c0_14] : memref<8x1xf32, #tpu.memory_space<vmem>>, vector<8x1xf32>
    %22 = vector.broadcast %21 : vector<8x1xf32> to vector<8x128xf32>
    %23 = arith.addf %20, %22 : vector<8x128xf32>
    %c0_15 = arith.constant 0 : index
    %c0_16 = arith.constant 0 : index
    %24 = vector.load %arg4[%c0_15, %c0_16] : memref<8x128xf32, #tpu.memory_space<vmem>>, vector<8x128xf32>
    tpu.vector_store %arg4[%c0_15, %c0_16], %23 {strides = array<i32>} : memref<8x128xf32, #tpu.memory_space<vmem>>, vector<8x128xf32>,
    return
  }
  func.func @transform_0(%arg0: i32) -> (i32, i32, i32) {
    %c0_i32 = arith.constant 0 : i32
    %c0_i32_0 = arith.constant 0 : i32
    %c0_i32_1 = arith.constant 0 : i32
    return %c0_i32, %c0_i32_0, %arg0 : i32, i32, i32
  }
  func.func @transform_1(%arg0: i32) -> (i32, i32) {
    %c0_i32 = arith.constant 0 : i32
    %c0_i32_0 = arith.constant 0 : i32
    %c0_i32_1 = arith.constant 0 : i32
    return %c0_i32, %c0_i32_0 : i32, i32
  }
  func.func @transform_2(%arg0: i32) -> (i32, i32) {
    %c0_i32 = arith.constant 0 : i32
    %c0_i32_0 = arith.constant 0 : i32
    %c0_i32_1 = arith.constant 0 : i32
    return %c0_i32, %c0_i32_0 : i32, i32
  }
  func.func @transform_3(%arg0: i32) -> (i32, i32) {
    %c0_i32 = arith.constant 0 : i32
    %c0_i32_0 = arith.constant 0 : i32
    return %c0_i32, %arg0 : i32, i32
  }
}

module attributes {stable_mosaic.version = 11 : i64} {
  func.func @_convpool_kernel(%arg0: i32, %arg1: memref<4x48x128xbf16, #tpu.memory_space<vmem>>, %arg2: memref<8x48xbf16, #tpu.memory_space<vmem>>, %arg3: memref<8x1xf32, #tpu.memory_space<vmem>>, %arg4: memref<8x128xf32, #tpu.memory_space<vmem>>) attributes {dimension_semantics = [#tpu.dimension_semantics<parallel>], iteration_bounds = array<i64: 1>, scalar_prefetch = 0 : i64, scratch_operands = 0 : i64, tpu.core_type = #tpu.core_type<tc>, window_params = [{transform_indices = @transform_0, window_bounds = array<i64: 4, 48, 128>}, {pipeline_mode = #tpu.pipeline_mode<synchronous>, transform_indices = @transform_1, window_bounds = array<i64: 8, 48>}, {pipeline_mode = #tpu.pipeline_mode<synchronous>, transform_indices = @transform_2, window_bounds = array<i64: 8, 1>}, {transform_indices = @transform_3, window_bounds = array<i64: 8, 128>}]} {
    %c0 = arith.constant 0 : index
    %c0_0 = arith.constant 0 : index
    %0 = vector.load %arg2[%c0, %c0_0] : memref<8x48xbf16, #tpu.memory_space<vmem>>, vector<8x48xbf16>
    %1 = arith.extf %0 : vector<8x48xbf16> to vector<8x48xf32>
    %c0_1 = arith.constant 0 : index
    %c0_2 = arith.constant 0 : index
    %c0_3 = arith.constant 0 : index
    %2 = vector.load %arg1[%c0_1, %c0_2, %c0_3] : memref<4x48x128xbf16, #tpu.memory_space<vmem>>, vector<1x48x128xbf16>
    %3 = vector.shape_cast %2 : vector<1x48x128xbf16> to vector<48x128xbf16>
    %4 = arith.extf %3 : vector<48x128xbf16> to vector<48x128xf32>
    %cst = arith.constant dense<0.000000e+00> : vector<8x128xf32>
    %5 = tpu.matmul %1, %4, %cst {dimension_numbers = #tpu.dot_dimension_numbers<[1], [0], [0], [1], [0, 0, 1, 1], [], []>} : vector<8x48xf32>, vector<48x128xf32>, vector<8x128xf32> -> vector<8x128xf32>
    %c1 = arith.constant 1 : index
    %c0_4 = arith.constant 0 : index
    %c0_5 = arith.constant 0 : index
    %6 = vector.load %arg1[%c1, %c0_4, %c0_5] : memref<4x48x128xbf16, #tpu.memory_space<vmem>>, vector<1x48x128xbf16>
    %7 = vector.shape_cast %6 : vector<1x48x128xbf16> to vector<48x128xbf16>
    %8 = arith.extf %7 : vector<48x128xbf16> to vector<48x128xf32>
    %cst_6 = arith.constant dense<0.000000e+00> : vector<8x128xf32>
    %9 = tpu.matmul %1, %8, %cst_6 {dimension_numbers = #tpu.dot_dimension_numbers<[1], [0], [0], [1], [0, 0, 1, 1], [], []>} : vector<8x48xf32>, vector<48x128xf32>, vector<8x128xf32> -> vector<8x128xf32>
    %10 = arith.maximumf %5, %9 : vector<8x128xf32>
    %c2 = arith.constant 2 : index
    %c0_7 = arith.constant 0 : index
    %c0_8 = arith.constant 0 : index
    %11 = vector.load %arg1[%c2, %c0_7, %c0_8] : memref<4x48x128xbf16, #tpu.memory_space<vmem>>, vector<1x48x128xbf16>
    %12 = vector.shape_cast %11 : vector<1x48x128xbf16> to vector<48x128xbf16>
    %13 = arith.extf %12 : vector<48x128xbf16> to vector<48x128xf32>
    %cst_9 = arith.constant dense<0.000000e+00> : vector<8x128xf32>
    %14 = tpu.matmul %1, %13, %cst_9 {dimension_numbers = #tpu.dot_dimension_numbers<[1], [0], [0], [1], [0, 0, 1, 1], [], []>} : vector<8x48xf32>, vector<48x128xf32>, vector<8x128xf32> -> vector<8x128xf32>
    %c3 = arith.constant 3 : index
    %c0_10 = arith.constant 0 : index
    %c0_11 = arith.constant 0 : index
    %15 = vector.load %arg1[%c3, %c0_10, %c0_11] : memref<4x48x128xbf16, #tpu.memory_space<vmem>>, vector<1x48x128xbf16>
    %16 = vector.shape_cast %15 : vector<1x48x128xbf16> to vector<48x128xbf16>
    %17 = arith.extf %16 : vector<48x128xbf16> to vector<48x128xf32>
    %cst_12 = arith.constant dense<0.000000e+00> : vector<8x128xf32>
    %18 = tpu.matmul %1, %17, %cst_12 {dimension_numbers = #tpu.dot_dimension_numbers<[1], [0], [0], [1], [0, 0, 1, 1], [], []>} : vector<8x48xf32>, vector<48x128xf32>, vector<8x128xf32> -> vector<8x128xf32>
    %19 = arith.maximumf %14, %18 : vector<8x128xf32>
    %20 = arith.maximumf %10, %19 : vector<8x128xf32>
    %c0_13 = arith.constant 0 : index
    %c0_14 = arith.constant 0 : index
    %21 = vector.load %arg3[%c0_13, %c0_14] : memref<8x1xf32, #tpu.memory_space<vmem>>, vector<8x1xf32>
    %22 = vector.broadcast %21 : vector<8x1xf32> to vector<8x128xf32>
    %23 = arith.addf %20, %22 : vector<8x128xf32>
    %c0_15 = arith.constant 0 : index
    %c0_16 = arith.constant 0 : index
    %24 = vector.load %arg4[%c0_15, %c0_16] : memref<8x128xf32, #tpu.memory_space<vmem>>, vector<8x128xf32>
    tpu.vector_store %arg4[%c0_15, %c0_16], %23 {strides = array<i32>} : memref<8x128xf32, #tpu.memory_space<vmem>>, vector<8x128xf32>,
    return
  }
  func.func @transform_0(%arg0: i32) -> (i32, i32, i32) {
    %c0_i32 = arith.constant 0 : i32
    %c0_i32_0 = arith.constant 0 : i32
    %c0_i32_1 = arith.constant 0 : i32
    return %c0_i32, %c0_i32_0, %arg0 : i32, i32, i32
  }
  func.func @transform_1(%arg0: i32) -> (i32, i32) {
    %c0_i32 = arith.constant 0 : i32
    %c0_i32_0 = arith.constant 0 : i32
    %c0_i32_1 = arith.constant 0 : i32
    return %c0_i32, %c0_i32_0 : i32, i32
  }
  func.func @transform_2(%arg0: i32) -> (i32, i32) {
    %c0_i32 = arith.constant 0 : i32
    %c0_i32_0 = arith.constant 0 : i32
    %c0_i32_1 = arith.constant 0 : i32
    return %c0_i32, %c0_i32_0 : i32, i32
  }
  func.func @transform_3(%arg0: i32) -> (i32, i32) {
    %c0_i32 = arith.constant 0 : i32
    %c0_i32_0 = arith.constant 0 : i32
    return %c0_i32, %arg0 : i32, i32
  }
}

</mosaic_0001>

<bundles_post_ra>
// kernel: conv_net_forward.2
= control target key start
LH: loop header
LB: loop body
LE: loop exit
PB: predicated region body
PF: predicated region fallthrough
CT: control target
= control target key end

     0   :  { %v498_v0 = vmov 0.0|0.0   ;;  %vm499_vm0 = vmmov 0   ;;  %v500_v6 = vmov 0.0   ;;  %v501_v8 = vmov 0   ;;  %s563_s0 = inlined_call_operand.vmem [shape: bf16[4,32,128], index: 0, kind: input, shape index: {}]   ;;  %s564_s1 = inlined_call_operand.vmem [shape: bf16[8,32], index: 1, kind: input, shape index: {}]   ;;  %s565_s2 = inlined_call_operand.vmem [shape: f32[8,1], index: 2, kind: input, shape index: {}]   ;;  %s566_s3 = inlined_call_operand.vmem [shape: f32[8,128], index: 3, kind: output, shape index: {}]  }
   0x1   :  { %469 = vmatprep.subr.bf16.mxu0 %v498_v0  ;;  %475 = vmatprep.subr.bf16.mxu1 %v498_v0  ;;  %v367_v1 = vld [vmem:[%s563_s0] sm:$0xff]   ;;  %v399_v2 = vld [vmem:[%s563_s0 + $0x10] sm:$0xff]   ;;  %v398_v4 = vld [vmem:[%s563_s0 + $0x8] sm:$0xff]   ;;  %vm24_vm1 = vcmask 261120  }
   0x2   :  { %471 = vmatpush3.bf16.msra.mxu0 %v367_v1  ;;  %477 = vmatpush3.bf16.msra.mxu1 %v399_v2  ;;  %v14_v3 = vld [vmem:[%s564_s1] sm:$0xf]  ;;  %v400_v5 = vld [vmem:[%s563_s0 + $0x18] sm:$0xff]   ;;  %v403_v11 = vld [vmem:[%s563_s0 + $0x30] sm:$0xff]  }
   0x3   :  { %472 = vmatprep.subr.bf16.mxu0 %v498_v0  ;;  %478 = vmatprep.subr.bf16.mxu1 %v498_v0  ;;  %v15_v7 = vunpack.c.l.bf16 %v14_v3  ;;  %v338_v9 = vld [vmem:[%s565_s2] sm:$0xff]  ;;  %v402_v12 = vld [vmem:[%s563_s0 + $0x28] sm:$0xff]   ;;  %v404_v13 = vld [vmem:[%s563_s0 + $0x38] sm:$0xff]  }
   0x4   :  { %433 = vmatprep.mubr.msk.f32.mxu0 %vm499_vm0, %v500_v6  ;;  %444 = vmatprep.mubr.msk.f32.mxu1 %vm499_vm0, %v500_v6  ;;  %v401_v10 = vld [vmem:[%s563_s0 + $0x20] sm:$0xff]  }
   0x5   :  { %497 = vset.pattern.permute.xlu0 %v501_v8 }
   0x6   :  { %474 = vmatpush3.bf16.msra.mxu0 %v398_v4  ;;  %480 = vmatpush3.bf16.msra.mxu1 %v400_v5 }
   0x7   :  { %481 = vmatprep.subr.bf16.mxu0 %v498_v0  ;;  %487 = vmatprep.subr.bf16.mxu1 %v498_v0 }
   0x8   :  { %341 = vperm.xlu0 %497, %v338_v9  }
   0x9   :  { %434 = vmatmul.mubr.msk.f32.vlgmr.msra.gmra.mrb[0].mxu0 %vm24_vm1, %v15_v7  ;;  %445 = vmatmul.mubr.msk.f32.vlgmr.msra.gmra.mrb[0].mxu1 %vm24_vm1, %v15_v7 }
   0xa   :  { %483 = vmatpush3.bf16.msra.mxu0 %v401_v10  ;;  %489 = vmatpush3.bf16.msra.mxu1 %v403_v11 }
   0xb   :  { %484 = vmatprep.subr.bf16.mxu0 %v498_v0  ;;  %490 = vmatprep.subr.bf16.mxu1 %v498_v0 }
   0xc   :  { %455 = vmatprep.mubr.msk.f32.mxu0 %vm499_vm0, %v500_v6  ;;  %466 = vmatprep.mubr.msk.f32.mxu1 %vm499_vm0, %v500_v6 }
   0xe   :  { %486 = vmatpush3.bf16.msra.mxu0 %v402_v12  ;;  %492 = vmatpush3.bf16.msra.mxu1 %v404_v13 }
  0x11   :  { %456 = vmatmul.mubr.msk.f32.vlgmr.msra.gmra.mrb[2].mxu0 %vm24_vm1, %v15_v7  ;;  %467 = vmatmul.mubr.msk.f32.vlgmr.msra.gmra.mrb[2].mxu1 %vm24_vm1, %v15_v7 }
  0x87   :  { %v342_v24 = vpop.permute.xlu0 %341 }
  0xdc   :  { %v94_v14 = vpop.f32.mrb[0].mxu0  ;;  %v173_v15 = vpop.f32.mrb[0].mxu1 }
  0xdd   :  { %v177_v16 = vmax.f32 %v94_v14, %v173_v15  ;;  %v435_v17 = vpop.f32.mrb[1].mxu0  ;;  %v446_v18 = vpop.f32.mrb[1].mxu1 }
  0xe4   :  { %v253_v19 = vpop.f32.mrb[2].mxu0  ;;  %v332_v20 = vpop.f32.mrb[2].mxu1 }
  0xe5   :  { %v336_v21 = vmax.f32 %v253_v19, %v332_v20  ;;  %v457_v22 = vpop.f32.mrb[3].mxu0  ;;  %v468_v23 = vpop.f32.mrb[3].mxu1 }
  0xe7   :  { %v337_v25 = vmax.f32 %v177_v16, %v336_v21 }
  0xe9   :  { %v344_v26 = vadd.f32 %v342_v24, %v337_v25 }
  0xeb   :  { %345 = vst [vmem:[%s566_s3] sm:$0xff] %v344_v26 }

// kernel: conv_net_forward.3
= control target key start
LH: loop header
LB: loop body
LE: loop exit
PB: predicated region body
PF: predicated region fallthrough
CT: control target
= control target key end

     0   :  { %v576_v0 = vmov 0.0|0.0   ;;  %vm577_vm0 = vmmov 0   ;;  %v578_v5 = vmov 0.0   ;;  %v579_v6 = vmov 0   ;;  %s653_s0 = inlined_call_operand.vmem [shape: bf16[4,48,128], index: 0, kind: input, shape index: {}]   ;;  %s654_s2 = inlined_call_operand.vmem [shape: f32[8,1], index: 2, kind: input, shape index: {}]   ;;  %s655_s1 = inlined_call_operand.vmem [shape: bf16[8,48], index: 1, kind: input, shape index: {}]   ;;  %s656_s3 = inlined_call_operand.vmem [shape: f32[8,128], index: 3, kind: output, shape index: {}]  }
   0x1   :  { %535 = vmatprep.subr.bf16.mxu0 %v576_v0  ;;  %544 = vmatprep.subr.bf16.mxu1 %v576_v0  ;;  %v389_v1 = vld [vmem:[%s653_s0] sm:$0xff]   ;;  %v438_v2 = vld [vmem:[%s653_s0 + $0x18] sm:$0xff]   ;;  %v436_v3 = vld [vmem:[%s653_s0 + $0x8] sm:$0xff]   ;;  %vm28_vm1 = vcmask 392192  }
   0x2   :  { %537 = vmatpush3.bf16.msra.mxu0 %v389_v1  ;;  %546 = vmatpush3.bf16.msra.mxu1 %v438_v2  ;;  %v439_v4 = vld [vmem:[%s653_s0 + $0x20] sm:$0xff]   ;;  %v437_v9 = vld [vmem:[%s653_s0 + $0x10] sm:$0xff]   ;;  %v440_v10 = vld [vmem:[%s653_s0 + $0x28] sm:$0xff]  }
   0x3   :  { %538 = vmatprep.subr.bf16.mxu0 %v576_v0  ;;  %547 = vmatprep.subr.bf16.mxu1 %v576_v0  ;;  %v354_v7 = vld [vmem:[%s654_s2] sm:$0xff]  ;;  %v441_v12 = vld [vmem:[%s653_s0 + $0x30] sm:$0xff]   ;;  %v444_v13 = vld [vmem:[%s653_s0 + $0x48] sm:$0xff]  }
   0x4   :  { %487 = vmatprep.mubr.msk.f32.mxu0 %vm577_vm0, %v578_v5  ;;  %502 = vmatprep.mubr.msk.f32.mxu1 %vm577_vm0, %v578_v5  ;;  %v14_v8 = vld [vmem:[%s655_s1] sm:$0xf]  ;;  %v442_v14 = vld [vmem:[%s653_s0 + $0x38] sm:$0xff]   ;;  %v445_v15 = vld [vmem:[%s653_s0 + $0x50] sm:$0xff]  }
   0x5   :  { %575 = vset.pattern.permute.xlu0 %v579_v6  ;;  %v15_v11 = vunpack.c.l.bf16 %v14_v8  ;;  %v443_v16 = vld [vmem:[%s653_s0 + $0x40] sm:$0xff]   ;;  %v446_v17 = vld [vmem:[%s653_s0 + $0x58] sm:$0xff]  }
   0x6   :  { %540 = vmatpush3.bf16.msra.mxu0 %v436_v3  ;;  %549 = vmatpush3.bf16.msra.mxu1 %v439_v4 }
   0x7   :  { %541 = vmatprep.subr.bf16.mxu0 %v576_v0  ;;  %550 = vmatprep.subr.bf16.mxu1 %v576_v0 }
   0x8   :  { %357 = vperm.xlu0 %575, %v354_v7  }
   0xa   :  { %543 = vmatpush3.bf16.msra.mxu0 %v437_v9  ;;  %552 = vmatpush3.bf16.msra.mxu1 %v440_v10 }
   0xb   :  { %553 = vmatprep.subr.bf16.mxu0 %v576_v0  ;;  %562 = vmatprep.subr.bf16.mxu1 %v576_v0 }
   0xd   :  { %488 = vmatmul.mubr.msk.f32.vlgmr.msra.gmra.mrb[0].mxu0 %vm28_vm1, %v15_v11  ;;  %503 = vmatmul.mubr.msk.f32.vlgmr.msra.gmra.mrb[0].mxu1 %vm28_vm1, %v15_v11 }
   0xe   :  { %555 = vmatpush3.bf16.msra.mxu0 %v441_v12  ;;  %564 = vmatpush3.bf16.msra.mxu1 %v444_v13 }
   0xf   :  { %556 = vmatprep.subr.bf16.mxu0 %v576_v0  ;;  %565 = vmatprep.subr.bf16.mxu1 %v576_v0 }
  0x10   :  { %517 = vmatprep.mubr.msk.f32.mxu0 %vm577_vm0, %v578_v5  ;;  %532 = vmatprep.mubr.msk.f32.mxu1 %vm577_vm0, %v578_v5 }
  0x12   :  { %558 = vmatpush3.bf16.msra.mxu0 %v442_v14  ;;  %567 = vmatpush3.bf16.msra.mxu1 %v445_v15 }
  0x13   :  { %559 = vmatprep.subr.bf16.mxu0 %v576_v0  ;;  %568 = vmatprep.subr.bf16.mxu1 %v576_v0 }
  0x16   :  { %561 = vmatpush3.bf16.msra.mxu0 %v443_v16  ;;  %570 = vmatpush3.bf16.msra.mxu1 %v446_v17 }
  0x19   :  { %518 = vmatmul.mubr.msk.f32.vlgmr.msra.gmra.mrb[2].mxu0 %vm28_vm1, %v15_v11  ;;  %533 = vmatmul.mubr.msk.f32.vlgmr.msra.gmra.mrb[2].mxu1 %vm28_vm1, %v15_v11 }
  0x87   :  { %v358_v28 = vpop.permute.xlu0 %357 }
  0xe0   :  { %v98_v18 = vpop.f32.mrb[0].mxu0  ;;  %v181_v19 = vpop.f32.mrb[0].mxu1 }
  0xe1   :  { %v185_v20 = vmax.f32 %v98_v18, %v181_v19  ;;  %v489_v21 = vpop.f32.mrb[1].mxu0  ;;  %v504_v22 = vpop.f32.mrb[1].mxu1 }
  0xec   :  { %v265_v23 = vpop.f32.mrb[2].mxu0  ;;  %v348_v24 = vpop.f32.mrb[2].mxu1 }
  0xed   :  { %v352_v25 = vmax.f32 %v265_v23, %v348_v24  ;;  %v519_v26 = vpop.f32.mrb[3].mxu0  ;;  %v534_v27 = vpop.f32.mrb[3].mxu1 }
  0xef   :  { %v353_v29 = vmax.f32 %v185_v20, %v352_v25 }
  0xf1   :  { %v360_v30 = vadd.f32 %v358_v28, %v353_v29 }
  0xf3   :  { %361 = vst [vmem:[%s656_s3] sm:$0xff] %v360_v30 }

</bundles_post_ra>
